<compile_context>
chip_gen: v7x
topology: tpu7x:2x2x1
jax: 0.10.0
libtpu: 0.0.40
codegen_flags: <defaults>
</compile_context>

<pallas_src>
import functools

import jax
import jax.numpy as jnp
from jax.experimental import pallas as pl
from jax.experimental.pallas import tpu as pltpu


def _locked_dropout_kernel(seed_ref, x_ref, o_ref, *,
                           batch, hidden, row_tile, thresh24, scale):
    # Global flattened row index for every element of this tile.
    row0 = pl.program_id(0) * row_tile
    r = row0 + jax.lax.broadcasted_iota(jnp.int32, (row_tile, hidden), 0)
    col = jax.lax.broadcasted_iota(jnp.int32, (row_tile, hidden), 1)

    # Time index t = r // batch, via float multiply + floor (avoids vector
    # integer division).  Exact for r up to ~4M rows.
    t = jnp.floor((r.astype(jnp.float32) + 0.5) * (1.0 / float(batch)))
    t = t.astype(jnp.int32)

    # Counter unique per (t, h); identical for all batch rows of the same t,
    # which is exactly the "locked" property.
    ctr = (t * hidden + col).astype(jnp.uint32)
    seed = seed_ref[0].astype(jnp.uint32)

    # Seeded murmur3 fmix32 — good avalanche on consecutive counters.
    h = ctr ^ (seed * jnp.uint32(0x9E3779B9))
    h = h ^ (h >> 16)
    h = h * jnp.uint32(0x85EBCA6B)
    h = h ^ (h >> 13)
    h = h * jnp.uint32(0xC2B2AE35)
    h = h ^ (h >> 16)

    # keep iff top-24 bits < thresh24 (signed compare; avoids unsigned cmp).
    keep = (h >> 8).astype(jnp.int32) < thresh24

    x = x_ref[...]
    # Compute in the input dtype (no f32 upcast); scale is a weak Python float.
    o_ref[...] = jnp.where(keep, x * scale, 0.0).astype(o_ref.dtype)


def locked_dropout(x, seed, dropout=0.5, training=True):
    """LockedDropout forward.  x: (T, B, H).  Returns same shape/dtype."""
    if (not training) or (dropout == 0.0):
        return x
    keep_prob = 1.0 - float(dropout)
    scale = 1.0 / keep_prob

    T, B, H = x.shape
    rows = T * B
    x2 = x.reshape(rows, H)                  # free: row-major contiguous view

    # Row tile: whole array when small, else a multiple of 8 targeting
    # ~2 MiB per buffer so double-buffered in+out (~8 MiB) fits every chip's
    # default scoped VMEM (v5e 16 MiB, v6e/v7x 32 MiB).
    bytes_per_row = H * x.dtype.itemsize
    target_rows = max(1, (2 * 1024 * 1024) // max(1, bytes_per_row))
    if rows <= max(target_rows, 8):
        row_tile = rows
    else:
        row_tile = max(8, (target_rows // 8) * 8)
    grid = (pl.cdiv(rows, row_tile),)

    thresh24 = min(int(round(keep_prob * (1 << 24))), 1 << 24)
    seed_arr = jnp.asarray([seed], dtype=jnp.int32)

    kernel = functools.partial(
        _locked_dropout_kernel, batch=B, hidden=H, row_tile=row_tile,
        thresh24=thresh24, scale=scale)

    out2 = pl.pallas_call(
        kernel,
        out_shape=jax.ShapeDtypeStruct((rows, H), x.dtype),
        grid=grid,
        in_specs=[
            pl.BlockSpec(memory_space=pltpu.SMEM),          # seed scalar
            pl.BlockSpec((row_tile, H), lambda i: (i, 0)),  # x row tile
        ],
        out_specs=pl.BlockSpec((row_tile, H), lambda i: (i, 0)),
        compiler_params=pltpu.CompilerParams(
            dimension_semantics=("parallel",)),
        cost_estimate=pl.CostEstimate(
            flops=int(rows) * int(H),
            transcendentals=0,
            bytes_accessed=int(2 * rows * H * x.dtype.itemsize)),
    )(seed_arr, x2)
    return out2.reshape(T, B, H)


if __name__ == "__main__":
    key = jax.random.PRNGKey(0)
    T, B, H = 8, 2, 128
    x = jax.random.normal(key, (T, B, H), dtype=jnp.float32)

    dropout = 0.5
    out = locked_dropout(x, seed=1234, dropout=dropout, training=True)
    out = jax.block_until_ready(out)

    # Shape / dtype preserved.
    assert out.shape == x.shape and out.dtype == x.dtype

    # Every element is either dropped (0) or scaled by 1/(1-p).
    scale = 1.0 / (1.0 - dropout)
    is_zero = jnp.isclose(out, 0.0)
    is_scaled = jnp.isclose(out, x * scale, rtol=1e-5, atol=1e-5)
    assert bool(jnp.all(is_zero | is_scaled))

    # Mask identical across the batch dim (locked dropout); only compare at
    # positions where both batch entries are clearly nonzero.
    m0 = jnp.isclose(out[:, 0, :], 0.0)
    m1 = jnp.isclose(out[:, 1, :], 0.0)
    valid = (jnp.abs(x[:, 0, :]) > 1e-3) & (jnp.abs(x[:, 1, :]) > 1e-3)
    assert bool(jnp.all(~valid | (m0 == m1)))

    # Drop rate roughly p.
    rate = float(jnp.sum(m0 & valid) / jnp.maximum(jnp.sum(valid), 1))
    assert 0.3 < rate < 0.7

    # Eval mode / dropout=0 passthrough.
    assert bool(jnp.all(locked_dropout(x, 0, dropout, training=False) == x))
    assert bool(jnp.all(locked_dropout(x, 0, 0.0, training=True) == x))

    print("KERNEL_OK")
</pallas_src>

<mosaic_0001>
module attributes {stable_mosaic.version = 11 : i64} {
  func.func @_locked_dropout_kernel(%arg0: i32, %arg1: memref<1xi32, #tpu.memory_space<smem>>, %arg2: memref<16x128xf32, #tpu.memory_space<vmem>>, %arg3: memref<16x128xf32, #tpu.memory_space<vmem>>) attributes {dimension_semantics = [#tpu.dimension_semantics<parallel>], iteration_bounds = array<i64: 1>, scalar_prefetch = 0 : i64, scratch_operands = 0 : i64, tpu.core_type = #tpu.core_type<tc>, window_params = [{transform_indices = @transform_0, window_bounds = array<i64: 1>}, {transform_indices = @transform_1, window_bounds = array<i64: 16, 128>}, {transform_indices = @transform_2, window_bounds = array<i64: 16, 128>}]} {
    %c16_i32 = arith.constant 16 : i32
    %0 = arith.muli %arg0, %c16_i32 : i32
    %1 = tpu.iota {dimensions = array<i32: 0>} : vector<16x128xi32>
    %2 = vector.broadcast %0 : i32 to vector<16x128xi32>
    %3 = arith.addi %2, %1 : vector<16x128xi32>
    %4 = tpu.iota {dimensions = array<i32: 1>} : vector<16x128xi32>
    %5 = arith.sitofp %3 : vector<16x128xi32> to vector<16x128xf32>
    %cst = arith.constant 5.000000e-01 : f32
    %6 = vector.broadcast %cst : f32 to vector<16x128xf32>
    %7 = arith.addf %5, %6 : vector<16x128xf32>
    %cst_0 = arith.constant 5.000000e-01 : f32
    %8 = vector.broadcast %cst_0 : f32 to vector<16x128xf32>
    %9 = arith.mulf %7, %8 : vector<16x128xf32>
    %10 = math.floor %9 : vector<16x128xf32>
    %11 = arith.fptosi %10 : vector<16x128xf32> to vector<16x128xi32>
    %c128_i32 = arith.constant 128 : i32
    %12 = vector.broadcast %c128_i32 : i32 to vector<16x128xi32>
    %13 = arith.muli %11, %12 : vector<16x128xi32>
    %14 = arith.addi %13, %4 : vector<16x128xi32>
    %c0 = arith.constant 0 : index
    %15 = memref.load %arg1[%c0] : memref<1xi32, #tpu.memory_space<smem>>
    %c-1640531527_i32 = arith.constant -1640531527 : i32
    %16 = arith.muli %15, %c-1640531527_i32 : i32
    %17 = vector.broadcast %16 : i32 to vector<16x128xi32>
    %18 = arith.xori %14, %17 : vector<16x128xi32>
    %c16_i32_1 = arith.constant 16 : i32
    %19 = vector.broadcast %c16_i32_1 : i32 to vector<16x128xi32>
    %20 = arith.shrui %18, %19 : vector<16x128xi32>
    %21 = arith.xori %18, %20 : vector<16x128xi32>
    %c-2048144789_i32 = arith.constant -2048144789 : i32
    %22 = vector.broadcast %c-2048144789_i32 : i32 to vector<16x128xi32>
    %23 = arith.muli %21, %22 : vector<16x128xi32>
    %c13_i32 = arith.constant 13 : i32
    %24 = vector.broadcast %c13_i32 : i32 to vector<16x128xi32>
    %25 = arith.shrui %23, %24 : vector<16x128xi32>
    %26 = arith.xori %23, %25 : vector<16x128xi32>
    %c-1028477387_i32 = arith.constant -1028477387 : i32
    %27 = vector.broadcast %c-1028477387_i32 : i32 to vector<16x128xi32>
    %28 = arith.muli %26, %27 : vector<16x128xi32>
    %c16_i32_2 = arith.constant 16 : i32
    %29 = vector.broadcast %c16_i32_2 : i32 to vector<16x128xi32>
    %30 = arith.shrui %28, %29 : vector<16x128xi32>
    %31 = arith.xori %28, %30 : vector<16x128xi32>
    %c8_i32 = arith.constant 8 : i32
    %32 = vector.broadcast %c8_i32 : i32 to vector<16x128xi32>
    %33 = arith.shrui %31, %32 : vector<16x128xi32>
    %c8388608_i32 = arith.constant 8388608 : i32
    %34 = vector.broadcast %c8388608_i32 : i32 to vector<16x128xi32>
    %35 = arith.cmpi slt, %33, %34 : vector<16x128xi32>
    %c0_3 = arith.constant 0 : index
    %c0_4 = arith.constant 0 : index
    %36 = vector.load %arg2[%c0_3, %c0_4] : memref<16x128xf32, #tpu.memory_space<vmem>>, vector<16x128xf32>
    %cst_5 = arith.constant 2.000000e+00 : f32
    %37 = vector.broadcast %cst_5 : f32 to vector<16x128xf32>
    %38 = arith.mulf %36, %37 : vector<16x128xf32>
    %cst_6 = arith.constant 0.000000e+00 : f32
    %39 = vector.broadcast %cst_6 : f32 to vector<16x128xf32>
    %40 = arith.select %35, %38, %39 : vector<16x128xi1>, vector<16x128xf32>
    %c0_7 = arith.constant 0 : index
    %c0_8 = arith.constant 0 : index
    %41 = vector.load %arg3[%c0_7, %c0_8] : memref<16x128xf32, #tpu.memory_space<vmem>>, vector<16x128xf32>
    tpu.vector_store %arg3[%c0_7, %c0_8], %40 {strides = array<i32>} : memref<16x128xf32, #tpu.memory_space<vmem>>, vector<16x128xf32>,
    return
  }
  func.func @transform_0(%arg0: i32) -> i32 {
    %c0_i32 = arith.constant 0 : i32
    %c0_i32_0 = arith.constant 0 : i32
    return %c0_i32 : i32
  }
  func.func @transform_1(%arg0: i32) -> (i32, i32) {
    %c0_i32 = arith.constant 0 : i32
    %c0_i32_0 = arith.constant 0 : i32
    return %arg0, %c0_i32 : i32, i32
  }
  func.func @transform_2(%arg0: i32) -> (i32, i32) {
    %c0_i32 = arith.constant 0 : i32
    %c0_i32_0 = arith.constant 0 : i32
    return %arg0, %c0_i32 : i32, i32
  }
}

</mosaic_0001>

<bundles_post_ra>
// kernel: tpu_custom_call.1
= control target key start
LH: loop header
LB: loop body
LE: loop exit
PB: predicated region body
PF: predicated region fallthrough
CT: control target
= control target key end

     0   :  { %8 = vsyncpa [#allocation4], 0  ;;  %s208_s0 = inlined_call_operand.<no memory space> [shape: s32[1], index: 0, kind: input, shape index: {}]   ;;  %s209_s1 = inlined_call_operand.hbm [shape: f32[16,128], index: 1, kind: input, shape index: {}]   ;;  %s210_s2 = inlined_call_operand.hbm [shape: f32[16,128], index: 2, kind: output, shape index: {}]  }
   0x1   :  { %9 = vsyncpa [#allocation5], 0  ;;  %s156_s9 = smov [#allocation3]   ;;  %s108_s13 = scalar_lea.hbm %s209_s1, 256 }
   0x2   :  { %s17_s10 = sshll.u32 %s156_s9, 4  ;;  %p109_p0 = scmp.ne.s32.totalorder %s209_s1, %s108_s13  ;;  %s18_s10 = int_to_ptr.vmem [resolvable:$true] %s17_s10 }
   0x3   :  { %p112_p1 = scmp.lt.u32.totalorder %s108_s13, %s209_s1 }
   0x5   :  { %p114_p2 = pnand %p112_p1, %p109_p0 }
   0x7   :  { %117 = shalt.err (!%p114_p2)
}
   0x8   :  { %s118_s18 = scalar_lea.vmem %s18_s10, 256  ;;  %p123_p4 = scmp.lt.s32.totalorder %s18_s10, %s18_s10 }
   0x9   :  { %p119_p3 = scmp.ne.s32.totalorder %s18_s10, %s118_s18  ;;  %p124_p5 = scmp.lt.s32.totalorder %s118_s18, %s118_s18 }
   0xb   :  { %p125_p6 = por %p124_p5, %p123_p4 }
   0xd   :  { %p126_p7 = pnand %p125_p6, %p119_p3 }
   0xf   :  { %129 = shalt.err (!%p126_p7)
}
  0x10   :  { %s157_s19 = smov 128   ;;  %s158_s20 = smov 8  }
  0x11   :  { %23 = dma.hbm_to_vmem [thread:$0]  %s209_s1, 256, %s18_s10, [#allocation4], %s157_s19, %s157_s19, %s158_s20  }
  0x12   :  { %152 = dma.done.wait [#allocation4], 256  }
  0x13   :  { %153 = vsyncadd [#allocation4], 4294967040  ;;  %v28_v0 = vlaneseq  ;;  %s51_s25 = smul.u32 2654435769, %s208_s0  ;;  %v75_v35 = vld [vmem:[#allocation3] sm:$0xff]  ;;  %v76_v39 = vld [vmem:[#allocation3 + $0x8] sm:$0xff] }
  0x14   :  { %v77_v40 = vmul.f32 2.0, %v75_v35  ;;  %v78_v43 = vmul.f32 2.0, %v76_v39  ;;  %s159_s0 = smov [#allocation6]  }
  0x15   :  { %v29_v1 = vshrl.u32 %v28_v0, 7  ;;  %v35_v12 = vand.u32 127, %v28_v0  ;;  %v52_v17 = vstv %s51_s25  ;;  %s88_s1 = sshll.u32 %s159_s0, 4  ;;  %s89_s1 = int_to_ptr.vmem [resolvable:$true] %s88_s1 }
  0x16   :  { %s130_s26 = scalar_lea.vmem %s89_s1, 256  ;;  %p135_p9 = scmp.lt.s32.totalorder %s89_s1, %s89_s1 }
  0x17   :  { %v36_v2 = vcvt.s32.f32 %v29_v1  ;;  %v30_v3 = vadd.s32 8, %v29_v1  ;;  %p131_p8 = scmp.ne.s32.totalorder %s89_s1, %s130_s26  ;;  %p136_p10 = scmp.lt.s32.totalorder %s130_s26, %s130_s26 }
  0x19   :  { %v38_v4 = vadd.f32 0.5, %v36_v2  ;;  %v37_v5 = vcvt.s32.f32 %v30_v3  ;;  %p137_p11 = por %p136_p10, %p135_p9 }
  0x1b   :  { %v40_v6 = vmul.f32 0.5, %v38_v4  ;;  %v39_v7 = vadd.f32 0.5, %v37_v5  ;;  %p138_p12 = pnand %p137_p11, %p131_p8 }
  0x1d   :  { %v42_v8 = vfloor.f32 %v40_v6  ;;  %v41_v9 = vmul.f32 0.5, %v39_v7 }
  0x1f   :  { %v100_v10 = vtrunc.f32 %v42_v8  ;;  %v43_v11 = vfloor.f32 %v41_v9 }
  0x21   :  { %v101_v13 = vcvt.f32.s32 %v100_v10  ;;  %v102_v14 = vtrunc.f32 %v43_v11 }
  0x23   :  { %v46_v15 = vmul.u32 128, %v101_v13  ;;  %v103_v16 = vcvt.f32.s32 %v102_v14 }
  0x25   :  { %v48_v18 = vadd.s32 %v46_v15, %v35_v12  ;;  %v47_v19 = vmul.u32 128, %v103_v16 }
  0x27   :  { %v53_v20 = vxor.u32 %v52_v17, %v48_v18  ;;  %v49_v21 = vadd.s32 %v47_v19, %v35_v12 }
  0x29   :  { %v55_v22 = vshrl.u32 %v53_v20, 16  ;;  %v54_v23 = vxor.u32 %v52_v17, %v49_v21 }
  0x2b   :  { %v57_v24 = vxor.u32 %v55_v22, %v53_v20  ;;  %v56_v25 = vshrl.u32 %v54_v23, 16 }
  0x2d   :  { %v59_v26 = vmul.u32 2246822507, %v57_v24  ;;  %v58_v27 = vxor.u32 %v56_v25, %v54_v23 }
  0x2f   :  { %v61_v28 = vshrl.u32 %v59_v26, 13  ;;  %v60_v29 = vmul.u32 2246822507, %v58_v27 }
  0x31   :  { %v63_v30 = vxor.u32 %v61_v28, %v59_v26  ;;  %v62_v31 = vshrl.u32 %v60_v29, 13 }
  0x33   :  { %v65_v32 = vmul.u32 3266489909, %v63_v30  ;;  %v64_v33 = vxor.u32 %v62_v31, %v60_v29 }
  0x35   :  { %v67_v34 = vshrl.u32 %v65_v32, 16  ;;  %v66_v36 = vmul.u32 3266489909, %v64_v33 }
  0x37   :  { %v69_v37 = vxor.u32 %v67_v34, %v65_v32  ;;  %v68_v38 = vshrl.u32 %v66_v36, 16 }
  0x39   :  { %v71_v41 = vshrl.u32 %v69_v37, 8  ;;  %v70_v42 = vxor.u32 %v68_v38, %v66_v36 }
  0x3b   :  { %vm73_vm0 = vcmp.lt.s32.totalorder %v71_v41, 8388608  ;;  %v72_v44 = vshrl.u32 %v70_v42, 8 }
  0x3c   :  { %v79_v45 = vsel %vm73_vm0, %v77_v40, 0.0 }
  0x3d   :  { %81 = vst [vmem:[#allocation6] sm:$0xff] %v79_v45  ;;  %vm74_vm1 = vcmp.lt.s32.totalorder %v72_v44, 8388608 }
  0x3e   :  { %v80_v46 = vsel %vm74_vm1, %v78_v43, 0.0 }
  0x3f   :  { %82 = vst [vmem:[#allocation6 + $0x8] sm:$0xff] %v80_v46 }
  0x40   :  { %141 = shalt.err (!%p138_p12)
}
  0x41   :  { %s142_s29 = scalar_lea.hbm %s210_s2, 256 }
  0x42   :  { %p143_p13 = scmp.ne.s32.totalorder %s210_s2, %s142_s29  ;;  %p146_p0 = scmp.lt.u32.totalorder %s142_s29, %s210_s2 }
  0x44   :  { %p148_p1 = pnand %p146_p0, %p143_p13 }
  0x46   :  { %151 = shalt.err (!%p148_p1)
}
  0x47   :  { %94 = dma.vmem_to_hbm [thread:$0]  %s89_s1, 256, %s210_s2, [#allocation5], %s157_s19, %s157_s19, %s158_s20  }
  0x48   :  { %154 = dma.done.wait [#allocation5], 256  }
  0x49   :  { %155 = vsyncadd [#allocation5], 4294967040 }
  0x4a   :  { %98 = vsyncpa [#allocation4], 1 }
  0x4b   :  { %99 = vsyncpa [#allocation5], 1 }

</bundles_post_ra>
